<compile_context>
chip_gen: v7x
topology: tpu7x:2x2x1
jax: 0.10.0
libtpu: 0.0.40
codegen_flags: <defaults>
</compile_context>

<pallas_src>
import functools

import jax
import jax.numpy as jnp
from jax.experimental import pallas as pl
from jax.experimental.pallas import tpu as pltpu


def _mlstm_kernel(K, H,
                  xhd_ref, cell_ref,
                  wg_ref, bg_ref, wout_ref, bout_ref,
                  out_ref, hid_ref, hc1_ref, d_ref):
    """One fused MLSTM cell step.

    xhd_ref  : (B, I+2H)   [sample | hidden | d0]
    cell_ref : (K, B, H)   cell-state history (aliased with hc1_ref)
    wg_ref   : (I+2H, 4H)  packed gate weights, columns [i | o | c | f]
    bg_ref   : (1, 4H)     packed gate biases
    wout_ref : (H, O), bout_ref : (1, O)
    """
    xhd = xhd_ref[...]
    # Read the full history ONCE, before any store to the aliased hc1_ref.
    ct = cell_ref[...]                                   # (K, B, H)

    # Single MXU push for all four gates (i, o, c, f); f32 accumulation.
    z = jnp.dot(xhd, wg_ref[...], preferred_element_type=jnp.float32)
    z = z + bg_ref[...]                                  # (B, 4H)

    i_gate = jax.nn.sigmoid(z[:, 0 * H:1 * H])
    o_gate = jax.nn.sigmoid(z[:, 1 * H:2 * H])
    c_tilde = jnp.tanh(z[:, 2 * H:3 * H])
    d = jax.nn.sigmoid(z[:, 3 * H:4 * H]) * jnp.float32(0.5)

    # Fractional-order (Grunwald-Letnikov) filter:
    #   coef_j = prod_{i=0..j} (i - d) / (i + 1)
    #   first  = - sum_j coef_j * celltensor[K-1-j]
    # 1/(j+1) is a compile-time constant -> multiply, never divide (no EUP op
    # on the serial coef dependence chain).
    # TODO(synk): for large K, switch to lax.fori_loop over a ring-buffered
    # cell slot (scalar-prefetched write index) to bound vreg live ranges and
    # drop the O(K*B*H) history shift below entirely.
    coef = jnp.ones_like(d)
    acc = jnp.zeros_like(d)
    for j in range(K):
        coef = coef * (jnp.float32(j) - d) * jnp.float32(1.0 / (j + 1))
        acc = acc + coef * ct[K - 1 - j]
    first = -acc

    cell = first + c_tilde * i_gate                      # (B, H)
    new_hidden = jnp.tanh(cell) * o_gate                 # (B, H)
    output = jnp.dot(new_hidden.astype(wout_ref.dtype), wout_ref[...],
                     preferred_element_type=jnp.float32) + bout_ref[...]

    # hc1 = cat([celltensor, cell[None]], 0)[1:]  (shift history, append cell).
    # cell_ref/hc1_ref may alias; `ct` was fully loaded above, so this is safe.
    if K > 1:
        hc1_ref[0:K - 1] = ct[1:K]
    hc1_ref[K - 1] = cell

    # TODO(synk): at realistic H (>=128) pack output/new_hidden/d into one
    # lane-dense slab so these become full-width vst instead of masked stores.
    out_ref[...] = output
    hid_ref[...] = new_hidden
    d_ref[...] = d


def _pack_gate_params(params, matmul_dtype):
    """Pack the per-gate weights into one (I+2H, 4H) matrix, columns [i|o|c|f].

    Row blocks are [x rows; h rows; d0 rows]; the d0 rows are zero for the
    i/o/c gates (they only see [x, h]) and wfd for the forget gate.
    """
    H = params["wih"].shape[0]
    zeros_dH = jnp.zeros((H, H), jnp.float32)
    col_i = jnp.concatenate([params["wix"], params["wih"], zeros_dH], axis=0)
    col_o = jnp.concatenate([params["wox"], params["woh"], zeros_dH], axis=0)
    col_c = jnp.concatenate([params["wcx"], params["wch"], zeros_dH], axis=0)
    col_f = jnp.concatenate([params["wfx"], params["wfh"], params["wfd"]], axis=0)
    w_gates = jnp.concatenate([col_i, col_o, col_c, col_f], axis=1)  # (I+2H, 4H)
    b_gates = jnp.concatenate(
        [params["bi"], params["bo"], params["bc"], params["bf"]], axis=1)  # (1, 4H)
    return w_gates.astype(matmul_dtype), b_gates.astype(jnp.float32)


def _nbytes(shape, dtype):
    n = 1
    for s in shape:
        n *= int(s)
    return n * jnp.dtype(dtype).itemsize


def mlstm_cell_pallas(sample, hidden, celltensor, d0, params, K, *,
                      matmul_dtype=jnp.float32):
    # TODO(synk): for full sequences, wrap this cell in a single pallas_call
    # with grid=(T,) (weights on constant index_maps so they stay
    # VMEM-resident, hidden/cell history in VMEM scratch) and a leading
    # "parallel" batch axis for v7x's 2 TensorCores; the module's forward is a
    # single step, so the per-step API is kept here.
    assert K >= 1, "MLSTM_cell requires K >= 1"
    B, I = sample.shape
    H = params["wih"].shape[0]
    O = params["wout"].shape[1]

    # [sample | hidden | d0] -> one (B, I+2H) matmul operand.  Done in the
    # wrapper: at these sub-128-lane widths an in-kernel concat is pure
    # lane-shuffle overhead, and XLA fuses this into the producers.
    xhd = jnp.concatenate([sample, hidden, d0], axis=1).astype(matmul_dtype)
    w_gates, b_gates = _pack_gate_params(params, matmul_dtype)
    w_out = params["wout"].astype(matmul_dtype)
    b_out = params["bout"].astype(jnp.float32)

    out_shapes = (
        jax.ShapeDtypeStruct((B, O), jnp.float32),      # output
        jax.ShapeDtypeStruct((B, H), jnp.float32),      # new hidden
        jax.ShapeDtypeStruct((K, B, H), jnp.float32),   # hc1 (aliases celltensor)
        jax.ShapeDtypeStruct((B, H), jnp.float32),      # d
    )
    args = (xhd, celltensor, w_gates, b_gates, w_out, b_out)

    # Re-derive the VMEM budget from the actual footprint (everything is
    # resident at once; no grid) — stay well below v7x's 64 MiB physical VMEM.
    data_bytes = int(sum(_nbytes(a.shape, a.dtype) for a in args)
                     + sum(_nbytes(s.shape, s.dtype) for s in out_shapes))
    vmem_limit = int(min(max(4 * data_bytes, 16 << 20), 48 << 20))

    flops = (2 * B * (I + 2 * H) * 4 * H      # fused gate matmul
             + 2 * B * H * O                  # output projection
             + (4 * K + 6) * B * H)           # GL filter + cell/hidden updates
    cost = pl.CostEstimate(flops=flops,
                           transcendentals=5 * B * H,   # 4 gates + tanh(cell)
                           bytes_accessed=data_bytes)

    vmem_spec = pl.BlockSpec(memory_space=pltpu.MemorySpace.VMEM)
    return pl.pallas_call(
        functools.partial(_mlstm_kernel, K, H),
        out_shape=out_shapes,
        in_specs=[vmem_spec] * len(args),
        out_specs=(vmem_spec,) * 4,
        # Reuse the (K, B, H) history buffer in place for hc1 when the caller
        # donates celltensor; forward semantics are identical either way.
        input_output_aliases={1: 2},
        compiler_params=pltpu.CompilerParams(vmem_limit_bytes=vmem_limit),
        cost_estimate=cost,
    )(*args)


def mlstm_cell_ref(sample, hidden, celltensor, d0, params, K):
    """Pure-JAX reference replicating the PyTorch forward exactly."""
    d = jax.nn.sigmoid(
        sample @ params["wfx"] + hidden @ params["wfh"] + d0 @ params["wfd"]
        + params["bf"]) * 0.5

    coef = jnp.ones_like(d)
    acc = jnp.zeros_like(d)
    for j in range(K):
        coef = coef * ((j - d) / (j + 1))
        acc = acc + coef * celltensor[K - 1 - j]
    first = -acc

    i_gate = jax.nn.sigmoid(sample @ params["wix"] + hidden @ params["wih"]
                            + params["bi"])
    o_gate = jax.nn.sigmoid(sample @ params["wox"] + hidden @ params["woh"]
                            + params["bo"])
    c_tilde = jnp.tanh(sample @ params["wcx"] + hidden @ params["wch"]
                       + params["bc"])
    cell = first + c_tilde * i_gate
    hc1 = jnp.concatenate([celltensor[1:], cell[None]], axis=0)
    new_hidden = jnp.tanh(cell) * o_gate
    output = new_hidden @ params["wout"] + params["bout"]
    return output, new_hidden, hc1, d


def make_params(key, input_size, hidden_size, K, output_size):
    """Deterministic synthetic parameters (split layout, (in, out) weights)."""
    I, H, O = input_size, hidden_size, output_size
    keys = jax.random.split(key, 16)
    u = lambda k, shape, fan_in: jax.random.uniform(
        k, shape, jnp.float32, -1.0, 1.0) / jnp.sqrt(jnp.float32(fan_in))
    return {
        # cgate / igate / ogate : Linear(I + H -> H), split into x/h parts
        "wcx": u(keys[0], (I, H), I + H), "wch": u(keys[1], (H, H), I + H),
        "bc": u(keys[2], (1, H), I + H),
        "wix": u(keys[3], (I, H), I + H), "wih": u(keys[4], (H, H), I + H),
        "bi": u(keys[5], (1, H), I + H),
        "wox": u(keys[6], (I, H), I + H), "woh": u(keys[7], (H, H), I + H),
        "bo": u(keys[8], (1, H), I + H),
        # fgate : Linear(I + 2H -> H), split into x/h/d parts
        "wfx": u(keys[9], (I, H), I + 2 * H), "wfh": u(keys[10], (H, H), I + 2 * H),
        "wfd": u(keys[11], (H, H), I + 2 * H), "bf": u(keys[12], (1, H), I + 2 * H),
        # output : Linear(H -> O)
        "wout": u(keys[13], (H, O), H), "bout": u(keys[14], (1, O), H),
    }


if __name__ == "__main__":
    B, I, H, K, O = 4, 16, 32, 4, 8

    key = jax.random.PRNGKey(0)
    k_par, k_x, k_h, k_c, k_d = jax.random.split(key, 5)

    params = make_params(k_par, I, H, K, O)
    sample = jax.random.normal(k_x, (B, I), jnp.float32)
    hidden = jax.random.normal(k_h, (B, H), jnp.float32)
    celltensor = jax.random.normal(k_c, (K, B, H), jnp.float32)
    d0 = jax.nn.sigmoid(jax.random.normal(k_d, (B, H), jnp.float32)) * 0.5

    # Reference first (the kernel may reuse a donated history buffer).
    ref = jax.block_until_ready(
        mlstm_cell_ref(sample, hidden, celltensor, d0, params, K))

    fn = jax.jit(mlstm_cell_pallas, static_argnums=(5,))
    out = jax.block_until_ready(fn(sample, hidden, celltensor, d0, params, K))

    for name, got, want in zip(("output", "hidden", "hc1", "d"), out, ref):
        assert got.shape == want.shape and got.dtype == want.dtype, name
        assert jnp.allclose(got, want, atol=1e-4, rtol=1e-4), (
            f"mismatch vs reference: {name}")

    print("KERNEL_OK")
</pallas_src>

<mosaic_0001>
module attributes {stable_mosaic.version = 11 : i64} {
  func.func @_mlstm_kernel(%arg0: memref<4x80xf32, #tpu.memory_space<vmem>>, %arg1: memref<4x4x32xf32, #tpu.memory_space<vmem>>, %arg2: memref<80x128xf32, #tpu.memory_space<vmem>>, %arg3: memref<1x128xf32, #tpu.memory_space<vmem>>, %arg4: memref<32x8xf32, #tpu.memory_space<vmem>>, %arg5: memref<1x8xf32, #tpu.memory_space<vmem>>, %arg6: memref<4x8xf32, #tpu.memory_space<vmem>>, %arg7: memref<4x32xf32, #tpu.memory_space<vmem>>, %arg8: memref<4x4x32xf32, #tpu.memory_space<vmem>>, %arg9: memref<4x32xf32, #tpu.memory_space<vmem>>) attributes {dimension_semantics = [], scalar_prefetch = 0 : i64, scratch_operands = 0 : i64, tpu.core_type = #tpu.core_type<tc>} {
    %c0 = arith.constant 0 : index
    %c0_0 = arith.constant 0 : index
    %0 = vector.load %arg0[%c0, %c0_0] : memref<4x80xf32, #tpu.memory_space<vmem>>, vector<4x80xf32>
    %c0_1 = arith.constant 0 : index
    %c0_2 = arith.constant 0 : index
    %c0_3 = arith.constant 0 : index
    %1 = vector.load %arg1[%c0_1, %c0_2, %c0_3] : memref<4x4x32xf32, #tpu.memory_space<vmem>>, vector<4x4x32xf32>
    %c0_4 = arith.constant 0 : index
    %c0_5 = arith.constant 0 : index
    %2 = vector.load %arg2[%c0_4, %c0_5] : memref<80x128xf32, #tpu.memory_space<vmem>>, vector<80x128xf32>
    %cst = arith.constant dense<0.000000e+00> : vector<4x128xf32>
    %3 = tpu.matmul %0, %2, %cst {dimension_numbers = #tpu.dot_dimension_numbers<[1], [0], [0], [1], [0, 0, 1, 1], [], []>} : vector<4x80xf32>, vector<80x128xf32>, vector<4x128xf32> -> vector<4x128xf32>
    %c0_6 = arith.constant 0 : index
    %c0_7 = arith.constant 0 : index
    %4 = vector.load %arg3[%c0_6, %c0_7] : memref<1x128xf32, #tpu.memory_space<vmem>>, vector<1x128xf32>
    %5 = vector.broadcast %4 : vector<1x128xf32> to vector<4x128xf32>
    %6 = arith.addf %3, %5 : vector<4x128xf32>
    %7 = vector.extract_strided_slice %6 {offsets = [0, 0], sizes = [4, 32], strides = [1, 1]} : vector<4x128xf32> to vector<4x32xf32>
    %8 = arith.negf %7 : vector<4x32xf32>
    %9 = math.exp %8 : vector<4x32xf32>
    %cst_8 = arith.constant 1.000000e+00 : f32
    %10 = vector.broadcast %cst_8 : f32 to vector<4x32xf32>
    %11 = arith.addf %10, %9 : vector<4x32xf32>
    %12 = arith.divf %10, %11 : vector<4x32xf32>
    %13 = vector.extract_strided_slice %6 {offsets = [0, 32], sizes = [4, 32], strides = [1, 1]} : vector<4x128xf32> to vector<4x32xf32>
    %14 = arith.negf %13 : vector<4x32xf32>
    %15 = math.exp %14 : vector<4x32xf32>
    %cst_9 = arith.constant 1.000000e+00 : f32
    %16 = vector.broadcast %cst_9 : f32 to vector<4x32xf32>
    %17 = arith.addf %16, %15 : vector<4x32xf32>
    %18 = arith.divf %16, %17 : vector<4x32xf32>
    %19 = vector.extract_strided_slice %6 {offsets = [0, 64], sizes = [4, 32], strides = [1, 1]} : vector<4x128xf32> to vector<4x32xf32>
    %20 = math.tanh %19 : vector<4x32xf32>
    %21 = vector.extract_strided_slice %6 {offsets = [0, 96], sizes = [4, 32], strides = [1, 1]} : vector<4x128xf32> to vector<4x32xf32>
    %22 = arith.negf %21 : vector<4x32xf32>
    %23 = math.exp %22 : vector<4x32xf32>
    %cst_10 = arith.constant 1.000000e+00 : f32
    %24 = vector.broadcast %cst_10 : f32 to vector<4x32xf32>
    %25 = arith.addf %24, %23 : vector<4x32xf32>
    %26 = arith.divf %24, %25 : vector<4x32xf32>
    %cst_11 = arith.constant 5.000000e-01 : f32
    %27 = vector.broadcast %cst_11 : f32 to vector<4x32xf32>
    %28 = arith.mulf %26, %27 : vector<4x32xf32>
    %cst_12 = arith.constant 1.000000e+00 : f32
    %29 = vector.broadcast %cst_12 : f32 to vector<4x32xf32>
    %cst_13 = arith.constant 0.000000e+00 : f32
    %30 = vector.broadcast %cst_13 : f32 to vector<4x32xf32>
    %cst_14 = arith.constant 0.000000e+00 : f32
    %31 = vector.broadcast %cst_14 : f32 to vector<4x32xf32>
    %32 = arith.subf %31, %28 : vector<4x32xf32>
    %33 = arith.mulf %29, %32 : vector<4x32xf32>
    %cst_15 = arith.constant 1.000000e+00 : f32
    %34 = vector.broadcast %cst_15 : f32 to vector<4x32xf32>
    %35 = arith.mulf %33, %34 : vector<4x32xf32>
    %36 = vector.extract_strided_slice %1 {offsets = [3, 0, 0], sizes = [1, 4, 32], strides = [1, 1, 1]} : vector<4x4x32xf32> to vector<1x4x32xf32>
    %37 = vector.shape_cast %36 : vector<1x4x32xf32> to vector<4x32xf32>
    %38 = arith.mulf %35, %37 : vector<4x32xf32>
    %39 = arith.addf %30, %38 : vector<4x32xf32>
    %cst_16 = arith.constant 1.000000e+00 : f32
    %40 = vector.broadcast %cst_16 : f32 to vector<4x32xf32>
    %41 = arith.subf %40, %28 : vector<4x32xf32>
    %42 = arith.mulf %35, %41 : vector<4x32xf32>
    %cst_17 = arith.constant 5.000000e-01 : f32
    %43 = vector.broadcast %cst_17 : f32 to vector<4x32xf32>
    %44 = arith.mulf %42, %43 : vector<4x32xf32>
    %45 = vector.extract_strided_slice %1 {offsets = [2, 0, 0], sizes = [1, 4, 32], strides = [1, 1, 1]} : vector<4x4x32xf32> to vector<1x4x32xf32>
    %46 = vector.shape_cast %45 : vector<1x4x32xf32> to vector<4x32xf32>
    %47 = arith.mulf %44, %46 : vector<4x32xf32>
    %48 = arith.addf %39, %47 : vector<4x32xf32>
    %cst_18 = arith.constant 2.000000e+00 : f32
    %49 = vector.broadcast %cst_18 : f32 to vector<4x32xf32>
    %50 = arith.subf %49, %28 : vector<4x32xf32>
    %51 = arith.mulf %44, %50 : vector<4x32xf32>
    %cst_19 = arith.constant 0.333333343 : f32
    %52 = vector.broadcast %cst_19 : f32 to vector<4x32xf32>
    %53 = arith.mulf %51, %52 : vector<4x32xf32>
    %54 = vector.extract_strided_slice %1 {offsets = [1, 0, 0], sizes = [1, 4, 32], strides = [1, 1, 1]} : vector<4x4x32xf32> to vector<1x4x32xf32>
    %55 = vector.shape_cast %54 : vector<1x4x32xf32> to vector<4x32xf32>
    %56 = arith.mulf %53, %55 : vector<4x32xf32>
    %57 = arith.addf %48, %56 : vector<4x32xf32>
    %cst_20 = arith.constant 3.000000e+00 : f32
    %58 = vector.broadcast %cst_20 : f32 to vector<4x32xf32>
    %59 = arith.subf %58, %28 : vector<4x32xf32>
    %60 = arith.mulf %53, %59 : vector<4x32xf32>
    %cst_21 = arith.constant 2.500000e-01 : f32
    %61 = vector.broadcast %cst_21 : f32 to vector<4x32xf32>
    %62 = arith.mulf %60, %61 : vector<4x32xf32>
    %63 = vector.extract_strided_slice %1 {offsets = [0, 0, 0], sizes = [1, 4, 32], strides = [1, 1, 1]} : vector<4x4x32xf32> to vector<1x4x32xf32>
    %64 = vector.shape_cast %63 : vector<1x4x32xf32> to vector<4x32xf32>
    %65 = arith.mulf %62, %64 : vector<4x32xf32>
    %66 = arith.addf %57, %65 : vector<4x32xf32>
    %cst_22 = arith.constant 0.000000e+00 : f32
    %67 = vector.broadcast %cst_22 : f32 to vector<4x32xf32>
    %68 = arith.subf %67, %66 : vector<4x32xf32>
    %69 = arith.mulf %20, %12 : vector<4x32xf32>
    %70 = arith.addf %68, %69 : vector<4x32xf32>
    %71 = math.tanh %70 : vector<4x32xf32>
    %72 = arith.mulf %71, %18 : vector<4x32xf32>
    %c0_23 = arith.constant 0 : index
    %c0_24 = arith.constant 0 : index
    %73 = vector.load %arg4[%c0_23, %c0_24] : memref<32x8xf32, #tpu.memory_space<vmem>>, vector<32x8xf32>
    %cst_25 = arith.constant dense<0.000000e+00> : vector<4x8xf32>
    %74 = tpu.matmul %72, %73, %cst_25 {dimension_numbers = #tpu.dot_dimension_numbers<[1], [0], [0], [1], [0, 0, 1, 1], [], []>} : vector<4x32xf32>, vector<32x8xf32>, vector<4x8xf32> -> vector<4x8xf32>
    %c0_26 = arith.constant 0 : index
    %c0_27 = arith.constant 0 : index
    %75 = vector.load %arg5[%c0_26, %c0_27] : memref<1x8xf32, #tpu.memory_space<vmem>>, vector<1x8xf32>
    %76 = vector.broadcast %75 : vector<1x8xf32> to vector<4x8xf32>
    %77 = arith.addf %74, %76 : vector<4x8xf32>
    %78 = vector.extract_strided_slice %1 {offsets = [1, 0, 0], sizes = [3, 4, 32], strides = [1, 1, 1]} : vector<4x4x32xf32> to vector<3x4x32xf32>
    %c0_28 = arith.constant 0 : index
    %c0_29 = arith.constant 0 : index
    %c0_30 = arith.constant 0 : index
    %79 = vector.load %arg8[%c0_28, %c0_29, %c0_30] : memref<4x4x32xf32, #tpu.memory_space<vmem>>, vector<3x4x32xf32>
    tpu.vector_store %arg8[%c0_28, %c0_29, %c0_30], %78 {strides = array<i32>} : memref<4x4x32xf32, #tpu.memory_space<vmem>>, vector<3x4x32xf32>,
    %c3 = arith.constant 3 : index
    %c0_31 = arith.constant 0 : index
    %c0_32 = arith.constant 0 : index
    %80 = vector.load %arg8[%c3, %c0_31, %c0_32] : memref<4x4x32xf32, #tpu.memory_space<vmem>>, vector<1x4x32xf32>
    %81 = vector.shape_cast %80 : vector<1x4x32xf32> to vector<4x32xf32>
    %82 = vector.shape_cast %70 : vector<4x32xf32> to vector<1x4x32xf32>
    tpu.vector_store %arg8[%c3, %c0_31, %c0_32], %82 {strides = array<i32>} : memref<4x4x32xf32, #tpu.memory_space<vmem>>, vector<1x4x32xf32>,
    %c0_33 = arith.constant 0 : index
    %c0_34 = arith.constant 0 : index
    %83 = vector.load %arg6[%c0_33, %c0_34] : memref<4x8xf32, #tpu.memory_space<vmem>>, vector<4x8xf32>
    tpu.vector_store %arg6[%c0_33, %c0_34], %77 {strides = array<i32>} : memref<4x8xf32, #tpu.memory_space<vmem>>, vector<4x8xf32>,
    %c0_35 = arith.constant 0 : index
    %c0_36 = arith.constant 0 : index
    %84 = vector.load %arg7[%c0_35, %c0_36] : memref<4x32xf32, #tpu.memory_space<vmem>>, vector<4x32xf32>
    tpu.vector_store %arg7[%c0_35, %c0_36], %72 {strides = array<i32>} : memref<4x32xf32, #tpu.memory_space<vmem>>, vector<4x32xf32>,
    %c0_37 = arith.constant 0 : index
    %c0_38 = arith.constant 0 : index
    %85 = vector.load %arg9[%c0_37, %c0_38] : memref<4x32xf32, #tpu.memory_space<vmem>>, vector<4x32xf32>
    tpu.vector_store %arg9[%c0_37, %c0_38], %28 {strides = array<i32>} : memref<4x32xf32, #tpu.memory_space<vmem>>, vector<4x32xf32>,
    return
  }
}

</mosaic_0001>

<bundles_post_ra>
// kernel: mlstm_cell_pallas.1
= control target key start
LH: loop header
LB: loop body
LE: loop exit
PB: predicated region body
PF: predicated region fallthrough
CT: control target
= control target key end

     0   :  { %15 = vsyncpa [#allocation3], 0  ;;  %s774_s0 = inlined_call_operand.vmem [shape: f32[4,80], index: 0, kind: input, shape index: {}]   ;;  %s775_s1 = inlined_call_operand.hbm [shape: f32[4,4,32], index: 1, kind: input, shape index: {}, may-alias: {1,8}]   ;;  %s776_s2 = inlined_call_operand.vmem [shape: f32[80,128], index: 2, kind: input, shape index: {}]   ;;  %s777_s3 = inlined_call_operand.vmem [shape: f32[1,128], index: 3, kind: input, shape index: {}]   ;;  %s778_s4 = inlined_call_operand.vmem [shape: f32[32,8], index: 4, kind: input, shape index: {}]   ;;  %s779_s5 = inlined_call_operand.vmem [shape: f32[1,8], index: 5, kind: input, shape index: {}]   ;;  %s780_s6 = inlined_call_operand.hbm [shape: f32[4,8], index: 6, kind: output, shape index: {0}]   ;;  %s781_s7 = inlined_call_operand.hbm [shape: f32[4,32], index: 7, kind: output, shape index: {1}]   ;;  %s782_s8 = inlined_call_operand.hbm [shape: f32[4,4,32], index: 8, kind: output, shape index: {2}, may-alias: {1,8}]   ;;  %s783_s9 = inlined_call_operand.hbm [shape: f32[4,32], index: 9, kind: output, shape index: {3}]  }
   0x1   :  { %16 = vsyncpa [#allocation4], 0 }
   0x2   :  { %17 = vsyncpa [#allocation7], 0 }
   0x3   :  { %18 = vsyncpa [#allocation10], 0  ;;  %s573_s30 = smov [#allocation2]   ;;  %s455_s13 = scalar_lea.hbm %s775_s1, 256 }
   0x4   :  { %s26_s10 = sshll.u32 %s573_s30, 4  ;;  %p456_p0 = scmp.ne.s32.totalorder %s775_s1, %s455_s13  ;;  %s27_s10 = int_to_ptr.vmem [resolvable:$true] %s26_s10 }
   0x5   :  { %p459_p1 = scmp.lt.u32.totalorder %s455_s13, %s775_s1 }
   0x7   :  { %p461_p2 = pnand %p459_p1, %p456_p0 }
   0x9   :  { %464 = shalt.err (!%p461_p2)
}
   0xa   :  { %s465_s18 = scalar_lea.vmem %s27_s10, 256  ;;  %p470_p4 = scmp.lt.s32.totalorder %s27_s10, %s27_s10 }
   0xb   :  { %p466_p3 = scmp.ne.s32.totalorder %s27_s10, %s465_s18  ;;  %p471_p5 = scmp.lt.s32.totalorder %s465_s18, %s465_s18 }
   0xd   :  { %p472_p6 = por %p471_p5, %p470_p4 }
   0xf   :  { %p473_p7 = pnand %p472_p6, %p466_p3 }
  0x11   :  { %476 = shalt.err (!%p473_p7)
}
  0x12   :  { %s574_s19 = smov 64   ;;  %s575_s20 = smov 4  }
  0x13   :  { %32 = dma.hbm_to_vmem [thread:$0]  %s775_s1, 256, %s27_s10, [#allocation3], %s574_s19, %s574_s19, %s575_s20  }
  0x14   :  { %565 = dma.done.wait [#allocation3], 256  }
  0x15   :  { %566 = vsyncadd [#allocation3], 4294967040  ;;  %v576_v0 = vmov 0.0|0.0   ;;  %vm577_vm0 = vmmov 0   ;;  %v578_v1 = vmov 0.0   ;;  %v49_v2 = vld [vmem:[%s776_s2] sm:$0xff] }
  0x16   :  { %414 = vmatprep.subr.bf16.mxu0 %v576_v0  ;;  %400 = vmatprep.mubr.msk.f32.mxu0 %vm577_vm0, %v578_v1  ;;  %v50_v3 = vld [vmem:[%s776_s2 + $0x8] sm:$0xff]  ;;  %v51_v4 = vld [vmem:[%s776_s2 + $0x10] sm:$0xff]  ;;  %v52_v6 = vld [vmem:[%s776_s2 + $0x18] sm:$0xff]  ;;  %vm282_vm1 = vcmask 257024   ;;  %s579_s13 = smov 96   ;;  %vm66_vm2 = vcmask 654336  }
  0x17   :  { %429 = vmatprep.subr.bf16.mxu1 %v576_v0  ;;  %411 = vmatprep.mubr.msk.f32.mxu1 %vm577_vm0, %v578_v1  ;;  %v415_v5 = vpack.c.bf16 %v50_v3, %v49_v2  ;;  %v418_v7 = vpack.c.bf16 %v52_v6, %v51_v4  ;;  %v47_v8 = vld [vmem:[#allocation2 + $0x8] sm:$0xf]  ;;  %v53_v9 = vld [vmem:[%s776_s2 + $0x20] sm:$0xff]  ;;  %v55_v13 = vld [vmem:[%s776_s2 + $0x30] sm:$0xff]  ;;  %vm209_vm3 = vcmask 261120  }
  0x18   :  { %v54_v10 = vld [vmem:[%s776_s2 + $0x28] sm:$0xff]  ;;  %159 = vrot.lane.b32.xlu1 %v47_v8, %s579_s13  ;;  %284 = vst.msk [vmem:[#allocation8 + $0x4] sm:$0xf] %vm282_vm1, %v47_v8  ;;  %v46_v11 = vld [vmem:[#allocation2 + $0x4] sm:$0xf]  ;;  %v56_v14 = vld [vmem:[%s776_s2 + $0x38] sm:$0xff] }
  0x19   :  { %416 = vmatpush3.bf16.msra.mxu0 %v415_v5  ;;  %283 = vst.msk [vmem:[#allocation8] sm:$0xf] %vm282_vm1, %v46_v11  ;;  %v421_v12 = vpack.c.bf16 %v54_v10, %v53_v9  ;;  %v424_v15 = vpack.c.bf16 %v56_v14, %v55_v13  ;;  %v57_v16 = vld [vmem:[%s776_s2 + $0x40] sm:$0xff]  ;;  %v58_v17 = vld [vmem:[%s776_s2 + $0x48] sm:$0xff]  ;;  %v197_v54 = vld [vmem:[%s778_s4 + $0x10] sm:$0xff] }
  0x1a   :  { %417 = vmatprep.subr.bf16.mxu0 %v576_v0  ;;  %v427_v18 = vpack.c.bf16 %v58_v17, %v57_v16  ;;  %v44_v19 = vld [vmem:[%s774_s0] sm:$0xf]  ;;  %v48_v20 = vld [vmem:[#allocation2 + $0xc] sm:$0xf]  ;;  %s580_s0 = smov 32   ;;  %v198_v58 = vld [vmem:[%s778_s4 + $0x18] sm:$0xff] }
  0x1b   :  { %285 = vst.msk [vmem:[#allocation8 + $0x8] sm:$0xf] %vm282_vm1, %v48_v20  ;;  %v359_v21 = vld [vmem:[%s777_s3] ss:$0 sm:$0xff]  ;;  %v196_v53 = vld [vmem:[%s778_s4 + $0x8] sm:$0xff]  ;;  %v433_v59 = vpack.c.bf16 %v198_v58, %v197_v54 }
  0x1c   :  { %168 = vrot.lane.b32.xlu1 %v46_v11, %s579_s13  ;;  %v45_v29 = vld [vmem:[#allocation2] sm:$0xf] }
  0x1d   :  { %419 = vmatpush3.bf16.msra.mxu0 %v418_v7  ;;  %v195_v52 = vld [vmem:[%s778_s4] sm:$0xff]  ;;  %s581_s4 = smov [#allocation6]  }
  0x1e   :  { %420 = vmatprep.subr.bf16.mxu0 %v576_v0  ;;  %v430_v57 = vpack.c.bf16 %v196_v53, %v195_v52  ;;  %s317_s12 = sshll.u32 %s581_s4, 4  ;;  %s318_s12 = int_to_ptr.vmem [resolvable:$true] %s317_s12 }
  0x1f   :  { %p482_p9 = scmp.lt.s32.totalorder %s318_s12, %s318_s12 }
  0x20   :  { %431 = vmatpush3.bf16.msra.mxu1 %v430_v57 }
  0x21   :  { %422 = vmatpush3.bf16.msra.mxu0 %v421_v12  ;;  %432 = vmatprep.subr.bf16.mxu1 %v576_v0 }
  0x22   :  { %423 = vmatprep.subr.bf16.mxu0 %v576_v0 }
  0x24   :  { %434 = vmatpush3.bf16.msra.mxu1 %v433_v59 }
  0x25   :  { %425 = vmatpush3.bf16.msra.mxu0 %v424_v15 }
  0x26   :  { %426 = vmatprep.subr.bf16.mxu0 %v576_v0 }
  0x29   :  { %428 = vmatpush3.bf16.msra.mxu0 %v427_v18 }
  0x2c   :  { %401 = vmatmul.mubr.msk.f32.vlgmr.msra.gmra.mrb[0].mxu0 %vm66_vm2, %v44_v19 }
  0x8a   :  { %v160_v40 = vpop.permute.xlu1 %159 }
  0x8e   :  { %v169_v47 = vpop.permute.xlu1 %168 }
  0xff   :  { %v136_v22 = vpop.f32.mrb[0].mxu0 }
 0x100   :  { %v137_v23 = vadd.f32 %v359_v21, %v136_v22  ;;  %v402_v24 = vpop.f32.mrb[1].mxu0 }
 0x102   :  { %v361_v25 = vmul.f32 -1.442695, %v137_v23 }
 0x104   :  { %447 = vpow2.f32 %v361_v25 }
 0x10e   :  { %v448_v26 = vpop.eup %447 }
 0x10f   :  { %v143_v27 = vadd.f32 1.0, %v448_v26 }
 0x111   :  { %449 = vrcp.f32 %v143_v27 }
 0x112   :  { %451 = vtanh.f32 %v137_v23 }
 0x11b   :  { %v450_v28 = vpop.eup %449 }
 0x11c   :  { %184 = vrot.lane.b32.xlu0 %v450_v28, %s574_s19  ;;  %v452_v30 = vpop.eup %451  ;;  %v147_v33 = vmul.f32 0.5, %v450_v28 }
 0x11e   :  { %v148_v34 = vsub.f32 0.0, %v147_v33  ;;  %v155_v35 = vsub.f32 1.0, %v147_v33  ;;  %v164_v38 = vsub.f32 2.0, %v147_v33  ;;  %v173_v44 = vsub.f32 3.0, %v147_v33 }
 0x120   :  { %150 = vrot.lane.b32.xlu0 %v48_v20, %s579_s13  ;;  %v156_v36 = vmul.f32 %v155_v35, %v148_v34 }
 0x122   :  { %v157_v37 = vmul.f32 0.5, %v156_v36 }
 0x124   :  { %177 = vrot.lane.b32.xlu0 %v45_v29, %s579_s13  ;;  %v165_v39 = vmul.f32 %v164_v38, %v157_v37  ;;  %v162_v45 = vmul.f32 %v160_v40, %v157_v37  ;;  %s477_s13 = scalar_lea.vmem %s318_s12, 64 }
 0x125   :  { %p478_p8 = scmp.ne.s32.totalorder %s318_s12, %s477_s13  ;;  %p483_p10 = scmp.lt.s32.totalorder %s477_s13, %s477_s13 }
 0x126   :  { %v166_v42 = vmul.f32 0.33333334, %v165_v39 }
 0x127   :  { %p484_p11 = por %p483_p10, %p482_p9 }
 0x128   :  { %v174_v46 = vmul.f32 %v173_v44, %v166_v42  ;;  %v171_v50 = vmul.f32 %v169_v47, %v166_v42 }
 0x129   :  { %p485_p12 = pnand %p484_p11, %p478_p8 }
 0x12a   :  { %v175_v51 = vmul.f32 0.25, %v174_v46 }
 0x18e   :  { %v185_v31 = vpop.permute.xlu0 %184 }
 0x18f   :  { %v187_v32 = vmul.f32 %v452_v30, %v185_v31 }
 0x191   :  { %189 = vrot.lane.b32.xlu1 %v187_v32, %s580_s0 }
 0x192   :  { %v151_v41 = vpop.permute.xlu0 %150 }
 0x193   :  { %v153_v43 = vmul.f32 %v151_v41, %v148_v34 }
 0x195   :  { %v163_v48 = vadd.f32 %v162_v45, %v153_v43 }
 0x196   :  { %v178_v49 = vpop.permute.xlu0 %177 }
 0x197   :  { %v172_v55 = vadd.f32 %v171_v50, %v163_v48  ;;  %v180_v56 = vmul.f32 %v178_v49, %v175_v51 }
 0x199   :  { %v181_v60 = vadd.f32 %v180_v56, %v172_v55 }
 0x19b   :  { %v182_v61 = vsub.f32 0.0, %v181_v60 }
 0x203   :  { %v190_v62 = vpop.permute.xlu1 %189 }
 0x204   :  { %v192_v63 = vadd.f32 %v190_v62, %v182_v61 }
 0x206   :  { %453 = vtanh.f32 %v192_v63  ;;  %287 = vrot.lane.b32.xlu1 %v192_v63, %s580_s0 }
 0x210   :  { %v454_v1 = vpop.eup %453 }
 0x211   :  { %v194_v2 = vmul.f32 %v454_v1, %v185_v31 }
 0x213   :  { %207 = vrot.lane.b32.xlu0 %v194_v2, %s580_s0 }
 0x217   :  { %297 = vrot.lane.b32.xlu0 %v147_v33, %s580_s0 }
 0x278   :  { %v288_v3 = vpop.permute.xlu1 %287 }
 0x279   :  { %291 = vst.msk [vmem:[#allocation8 + $0xc] sm:$0xf] %vm282_vm1, %v288_v3 }
 0x285   :  { %v208_v4 = vpop.permute.xlu0 %207 }
 0x286   :  { %295 = vst.msk [vmem:[#allocation6] sm:$0xf] %vm282_vm1, %v208_v4  ;;  %412 = vmatmul.mubr.msk.f32.vlgmr.msra.gmra.mrb[0].mxu1 %vm209_vm3, %v208_v4 }
 0x289   :  { %v298_v0 = vpop.permute.xlu0 %297 }
 0x28a   :  { %300 = vst.msk [vmem:[#allocation9] sm:$0xf] %vm282_vm1, %v298_v0 }
 0x28b   :  { %488 = shalt.err (!%p485_p12)
}
 0x28c   :  { %s489_s16 = scalar_lea.hbm %s781_s7, 64 }
 0x28d   :  { %p490_p13 = scmp.ne.s32.totalorder %s781_s7, %s489_s16  ;;  %p493_p0 = scmp.lt.u32.totalorder %s489_s16, %s781_s7 }
 0x28f   :  { %p495_p1 = pnand %p493_p0, %p490_p13 }
 0x291   :  { %498 = shalt.err (!%p495_p1)
}
 0x292   :  { %320 = dma.vmem_to_hbm [thread:$0]  %s318_s12, 64, %s781_s7, [#allocation7]  }
 0x293   :  { %s582_s25 = smov [#allocation8]   ;;  %s583_s1 = smov [#allocation9]  }
 0x294   :  { %s326_s26 = sshll.u32 %s582_s25, 4  ;;  %s339_s0 = sshll.u32 %s583_s1, 4  ;;  %s327_s26 = int_to_ptr.vmem [resolvable:$true] %s326_s26  ;;  %s340_s0 = int_to_ptr.vmem [resolvable:$true] %s339_s0 }
 0x295   :  { %s499_s2 = scalar_lea.vmem %s327_s26, 256  ;;  %p504_p3 = scmp.lt.s32.totalorder %s327_s26, %s327_s26 }
 0x296   :  { %p500_p2 = scmp.ne.s32.totalorder %s327_s26, %s499_s2  ;;  %p505_p4 = scmp.lt.s32.totalorder %s499_s2, %s499_s2 }
 0x298   :  { %p506_p5 = por %p505_p4, %p504_p3 }
 0x29a   :  { %p507_p6 = pnand %p506_p5, %p500_p2 }
 0x29c   :  { %510 = shalt.err (!%p507_p6)
}
 0x29d   :  { %s511_s28 = scalar_lea.hbm %s782_s8, 256 }
 0x29e   :  { %p512_p7 = scmp.ne.s32.totalorder %s782_s8, %s511_s28  ;;  %p515_p8 = scmp.lt.u32.totalorder %s511_s28, %s782_s8 }
 0x2a0   :  { %p517_p9 = pnand %p515_p8, %p512_p7 }
 0x2a2   :  { %520 = shalt.err (!%p517_p9)
}
 0x2a3   :  { %332 = dma.vmem_to_hbm [thread:$0]  %s327_s26, 256, %s782_s8, [#allocation7], %s574_s19, %s574_s19, %s575_s20  }
 0x2a4   :  { %s521_s12 = scalar_lea.vmem %s340_s0, 64  ;;  %p526_p11 = scmp.lt.s32.totalorder %s340_s0, %s340_s0 }
 0x2a5   :  { %p522_p10 = scmp.ne.s32.totalorder %s340_s0, %s521_s12  ;;  %p527_p12 = scmp.lt.s32.totalorder %s521_s12, %s521_s12 }
 0x2a7   :  { %p528_p13 = por %p527_p12, %p526_p11 }
 0x2a9   :  { %p529_p0 = pnand %p528_p13, %p522_p10 }
 0x2ab   :  { %532 = shalt.err (!%p529_p0)
}
 0x2ac   :  { %s533_s15 = scalar_lea.hbm %s783_s9, 64 }
 0x2ad   :  { %p534_p1 = scmp.ne.s32.totalorder %s783_s9, %s533_s15  ;;  %p537_p2 = scmp.lt.u32.totalorder %s533_s15, %s783_s9 }
 0x2af   :  { %p539_p3 = pnand %p537_p2, %p534_p1 }
 0x2b1   :  { %542 = shalt.err (!%p539_p3)
}
 0x2b2   :  { %342 = dma.vmem_to_hbm [thread:$0]  %s340_s0, 64, %s783_s9, [#allocation10]   ;;  %v362_v5 = vld [vmem:[%s779_s5] ss:$0 sm:$0xff]  ;;  %vm292_vm4 = vcmask 60416  }
 0x2b3   :  { %s584_s23 = smov [#allocation5]  }
 0x2b4   :  { %s307_s24 = sshll.u32 %s584_s23, 4  ;;  %s308_s24 = int_to_ptr.vmem [resolvable:$true] %s307_s24 }
 0x2b5   :  { %s543_s25 = scalar_lea.vmem %s308_s24, 64  ;;  %p548_p5 = scmp.lt.s32.totalorder %s308_s24, %s308_s24 }
 0x2b6   :  { %p544_p4 = scmp.ne.s32.totalorder %s308_s24, %s543_s25  ;;  %p549_p6 = scmp.lt.s32.totalorder %s543_s25, %s543_s25 }
 0x2b8   :  { %p550_p7 = por %p549_p6, %p548_p5 }
 0x2ba   :  { %p551_p8 = pnand %p550_p7, %p544_p4 }
 0x359   :  { %v278_v6 = vpop.f32.mrb[0].mxu1 }
 0x35a   :  { %v279_v7 = vadd.f32 %v362_v5, %v278_v6  ;;  %v413_v8 = vpop.f32.mrb[1].mxu1 }
 0x35c   :  { %293 = vst.msk [vmem:[#allocation5] sm:$0xf] %vm292_vm4, %v279_v7 }
 0x35d   :  { %554 = shalt.err (!%p551_p8)
}
 0x35e   :  { %s555_s1 = scalar_lea.hbm %s780_s6, 64 }
 0x35f   :  { %p556_p9 = scmp.ne.s32.totalorder %s780_s6, %s555_s1  ;;  %p559_p10 = scmp.lt.u32.totalorder %s555_s1, %s780_s6 }
 0x361   :  { %p561_p11 = pnand %p559_p10, %p556_p9 }
 0x363   :  { %564 = shalt.err (!%p561_p11)
}
 0x364   :  { %310 = dma.vmem_to_hbm [thread:$0]  %s308_s24, 64, %s780_s6, [#allocation4]  }
 0x365   :  { %567 = dma.done.wait [#allocation4], 64  }
 0x366   :  { %568 = vsyncadd [#allocation4], 4294967232 }
 0x367   :  { %569 = dma.done.wait [#allocation7], 320  }
 0x368   :  { %570 = vsyncadd [#allocation7], 4294966976 }
 0x369   :  { %571 = dma.done.wait [#allocation10], 64  }
 0x36a   :  { %572 = vsyncadd [#allocation10], 4294967232 }
 0x36b   :  { %355 = vsyncpa [#allocation3], 1 }
 0x36c   :  { %356 = vsyncpa [#allocation4], 1 }
 0x36d   :  { %357 = vsyncpa [#allocation7], 1 }
 0x36e   :  { %358 = vsyncpa [#allocation10], 1 }

</bundles_post_ra>
